<compile_context>
chip_gen: v5e
topology: v5e:2x2
jax: 0.10.0
libtpu: 0.0.40
codegen_flags: <defaults>
</compile_context>

<pallas_src>
import jax
import jax.numpy as jnp
from jax.experimental import pallas as pl
from jax.experimental.pallas import tpu as pltpu


def _daf_add_kernel(x_ref, r_ref, o_ref):
    # Pure elementwise add on the whole VMEM tile (VPU).
    o_ref[...] = x_ref[...] + r_ref[...]


def _round_up(n, m):
    return ((n + m - 1) // m) * m


def daf(x, residual, *, target_block_bytes=4 * 1024 * 1024, cols=512):
    """DirectAddFuse: x + residual, computed in a Pallas TPU kernel."""
    assert x.shape == residual.shape, "DAF requires matching shapes"
    assert x.dtype == residual.dtype, "DAF requires matching dtypes"

    orig_shape = x.shape
    total = x.size
    itemsize = jnp.dtype(x.dtype).itemsize

    # Pad rows to a multiple of 32 sublanes: covers f32 (8), bf16 (16), int8/fp8 (32).
    SUBLANE = 32

    # Lane-dense, wide last dim (4 * 128 lanes) for long DMA bursts and
    # unmasked vector stores on the output stream.
    rows_needed = -(-total // cols)

    # Block rows sized so one operand block is ~target_block_bytes
    # (~4 MiB: safe on v5e/v6e/v7x once vmem_limit_bytes is raised).
    target_block_rows = max(
        SUBLANE, (target_block_bytes // (cols * itemsize)) // SUBLANE * SUBLANE
    )

    # Keep at least 2 grid steps when there is enough data so the "parallel"
    # grid axis can be sharded across both TensorCores on v7x.
    if rows_needed >= 2 * SUBLANE:
        max_block_rows = _round_up(max(rows_needed // 2, SUBLANE), SUBLANE)
    else:
        max_block_rows = _round_up(max(rows_needed, 1), SUBLANE)
    block_rows = min(target_block_rows, max_block_rows)

    grid_steps = -(-rows_needed // block_rows)
    rows_padded = grid_steps * block_rows
    padded_total = rows_padded * cols

    # Pad (instead of whole-array fallback blocks) so every input size takes
    # the tiled, pipelined path; slice the padding back off afterwards.
    x_flat = x.reshape(-1)
    r_flat = residual.reshape(-1)
    pad = padded_total - total
    if pad:
        x_flat = jnp.pad(x_flat, (0, pad))
        r_flat = jnp.pad(r_flat, (0, pad))
    x2 = x_flat.reshape(rows_padded, cols)
    r2 = r_flat.reshape(rows_padded, cols)

    block_bytes = block_rows * cols * itemsize
    # 2 inputs + 1 output, each double-buffered, plus headroom; floor at 16 MiB.
    vmem_limit = max(6 * block_bytes + (4 << 20), 16 << 20)

    out2 = pl.pallas_call(
        _daf_add_kernel,
        out_shape=jax.ShapeDtypeStruct((rows_padded, cols), x.dtype),
        grid=(grid_steps,),
        in_specs=[
            pl.BlockSpec((block_rows, cols), lambda i: (i, 0)),
            pl.BlockSpec((block_rows, cols), lambda i: (i, 0)),
        ],
        out_specs=pl.BlockSpec((block_rows, cols), lambda i: (i, 0)),
        compiler_params=pltpu.CompilerParams(
            dimension_semantics=("parallel",),
            vmem_limit_bytes=int(vmem_limit),
        ),
    )(x2, r2)

    out_flat = out2.reshape(-1)
    if pad:
        out_flat = out_flat[:total]
    return out_flat.reshape(orig_shape)


if __name__ == "__main__":
    key = jax.random.PRNGKey(0)
    kx, kr, kx2, kr2 = jax.random.split(key, 4)

    # NCHW, small shapes consistent with the module: batch=2, channels=4, 16x16.
    x = jax.random.normal(kx, (2, 4, 16, 16), dtype=jnp.float32)
    residual = jax.random.normal(kr, (2, 4, 16, 16), dtype=jnp.float32)
    out = jax.block_until_ready(daf(x, residual))
    ref = x + residual
    assert out.shape == ref.shape and out.dtype == ref.dtype
    assert jnp.allclose(out, ref, atol=1e-6, rtol=1e-6)

    # Second (still small) case exercising the padded, multi-step grid path.
    x2 = jax.random.normal(kx2, (1, 8, 64, 96), dtype=jnp.float32)
    r2 = jax.random.normal(kr2, (1, 8, 64, 96), dtype=jnp.float32)
    out2 = jax.block_until_ready(daf(x2, r2))
    ref2 = x2 + r2
    assert out2.shape == ref2.shape and out2.dtype == ref2.dtype
    assert jnp.allclose(out2, ref2, atol=1e-6, rtol=1e-6)

    print("KERNEL_OK")
</pallas_src>

<mosaic_0001>
module attributes {stable_mosaic.version = 11 : i64} {
  func.func @_daf_add_kernel(%arg0: i32, %arg1: memref<32x512xf32, #tpu.memory_space<vmem>>, %arg2: memref<32x512xf32, #tpu.memory_space<vmem>>, %arg3: memref<32x512xf32, #tpu.memory_space<vmem>>) attributes {dimension_semantics = [#tpu.dimension_semantics<parallel>], iteration_bounds = array<i64: 1>, scalar_prefetch = 0 : i64, scratch_operands = 0 : i64, tpu.core_type = #tpu.core_type<tc>, window_params = [{transform_indices = @transform_0, window_bounds = array<i64: 32, 512>}, {transform_indices = @transform_1, window_bounds = array<i64: 32, 512>}, {transform_indices = @transform_2, window_bounds = array<i64: 32, 512>}]} {
    %c0 = arith.constant 0 : index
    %c0_0 = arith.constant 0 : index
    %0 = vector.load %arg1[%c0, %c0_0] : memref<32x512xf32, #tpu.memory_space<vmem>>, vector<32x512xf32>
    %c0_1 = arith.constant 0 : index
    %c0_2 = arith.constant 0 : index
    %1 = vector.load %arg2[%c0_1, %c0_2] : memref<32x512xf32, #tpu.memory_space<vmem>>, vector<32x512xf32>
    %2 = arith.addf %0, %1 : vector<32x512xf32>
    %c0_3 = arith.constant 0 : index
    %c0_4 = arith.constant 0 : index
    %3 = vector.load %arg3[%c0_3, %c0_4] : memref<32x512xf32, #tpu.memory_space<vmem>>, vector<32x512xf32>
    tpu.vector_store %arg3[%c0_3, %c0_4], %2 {strides = array<i32>} : memref<32x512xf32, #tpu.memory_space<vmem>>, vector<32x512xf32>,
    return
  }
  func.func @transform_0(%arg0: i32) -> (i32, i32) {
    %c0_i32 = arith.constant 0 : i32
    %c0_i32_0 = arith.constant 0 : i32
    return %arg0, %c0_i32 : i32, i32
  }
  func.func @transform_1(%arg0: i32) -> (i32, i32) {
    %c0_i32 = arith.constant 0 : i32
    %c0_i32_0 = arith.constant 0 : i32
    return %arg0, %c0_i32 : i32, i32
  }
  func.func @transform_2(%arg0: i32) -> (i32, i32) {
    %c0_i32 = arith.constant 0 : i32
    %c0_i32_0 = arith.constant 0 : i32
    return %arg0, %c0_i32 : i32, i32
  }
}

</mosaic_0001>

<bundles_post_ra>
// kernel: tpu_custom_call.1
= control target key start
LH: loop header
LB: loop body
LE: loop exit
PB: predicated region body
PF: predicated region fallthrough
CT: control target
= control target key end

     0   :  { %7 = vsyncpa [#allocation3], 0  ;;  %s249_s0 = inlined_call_operand.hbm [shape: f32[32,512], index: 0, kind: input, shape index: {}]   ;;  %s250_s1 = inlined_call_operand.hbm [shape: f32[32,512], index: 1, kind: input, shape index: {}]   ;;  %s251_s2 = inlined_call_operand.hbm [shape: f32[32,512], index: 2, kind: output, shape index: {}]  }
   0x1   :  { %8 = vsyncpa [#allocation6], 0 }
   0x2   :  { %9 = vsyncpa [#allocation4], 0  ;;  %s14_s11 = sshll.u32 %s249_s0, 4  ;;  %s211_s12 = smov [#allocation2]   ;;  %s15_s11 = int_to_ptr.hbm [resolvable:$true] %s14_s11 }
   0x3   :  { %s16_s13 = sshll.u32 %s211_s12, 4  ;;  %s27_s16 = sshll.u32 %s250_s1, 4  ;;  %s17_s13 = int_to_ptr.vmem [resolvable:$true] %s16_s13  ;;  %s28_s16 = int_to_ptr.hbm [resolvable:$true] %s27_s16 }
   0x4   :  { %s212_s17 = smov 512   ;;  %s213_s18 = smov 32  }
   0x5   :  { %22 = dma.hbm_to_vmem [thread:$0]  %s15_s11, 2048, %s17_s13, [#allocation3], %s212_s17, %s212_s17, %s213_s18  }
   0x6   :  { %s214_s19 = smov [#allocation5]  }
   0x7   :  { %s29_s20 = sshll.u32 %s214_s19, 4  ;;  %s30_s20 = int_to_ptr.vmem [resolvable:$true] %s29_s20 }
   0x8   :  { %35 = dma.hbm_to_vmem [thread:$0]  %s28_s16, 2048, %s30_s20, [#allocation6], %s212_s17, %s212_s17, %s213_s18  }
   0x9   :  { %205 = dma.done.wait [#allocation3], 2048  }
   0xa   :  { %206 = vsyncadd [#allocation3], 4294965248 }
   0xb   :  { %207 = dma.done.wait [#allocation6], 2048  }
   0xc   :  { %208 = vsyncadd [#allocation6], 4294965248  ;;  %v44_v0 = vld [vmem:[#allocation2] sm:$0xff]  ;;  %v45_v2 = vld [vmem:[#allocation2 + $0x8] sm:$0xff]  ;;  %s215_s0 = smov [#allocation7]   ;;  %s114_s23 = sshll.u32 %s251_s2, 4  ;;  %s115_s23 = int_to_ptr.hbm [resolvable:$true] %s114_s23 }
   0xd   :  { %v60_v1 = vld [vmem:[#allocation5] sm:$0xff]  ;;  %v61_v4 = vld [vmem:[#allocation5 + $0x8] sm:$0xff]  ;;  %v46_v5 = vld [vmem:[#allocation2 + $0x10] sm:$0xff]  ;;  %s112_s1 = sshll.u32 %s215_s0, 4  ;;  %s113_s1 = int_to_ptr.vmem [resolvable:$true] %s112_s1 }
   0xe   :  { %v76_v3 = vadd.f32 %v60_v1, %v44_v0  ;;  %v62_v6 = vld [vmem:[#allocation5 + $0x10] sm:$0xff]  ;;  %v77_v7 = vadd.f32 %v61_v4, %v45_v2  ;;  %v47_v9 = vld [vmem:[#allocation2 + $0x18] sm:$0xff]  ;;  %v48_v11 = vld [vmem:[#allocation2 + $0x20] sm:$0xff] }
   0xf   :  { %v78_v8 = vadd.f32 %v62_v6, %v46_v5  ;;  %v63_v10 = vld [vmem:[#allocation5 + $0x18] sm:$0xff]  ;;  %v64_v13 = vld [vmem:[#allocation5 + $0x20] sm:$0xff]  ;;  %v49_v14 = vld [vmem:[#allocation2 + $0x28] sm:$0xff] }
  0x10   :  { %92 = vst [vmem:[#allocation7] sm:$0xff] %v76_v3  ;;  %v79_v12 = vadd.f32 %v63_v10, %v47_v9  ;;  %v65_v15 = vld [vmem:[#allocation5 + $0x28] sm:$0xff]  ;;  %v80_v16 = vadd.f32 %v64_v13, %v48_v11  ;;  %v50_v18 = vld [vmem:[#allocation2 + $0x30] sm:$0xff]  ;;  %v51_v20 = vld [vmem:[#allocation2 + $0x38] sm:$0xff] }
  0x11   :  { %93 = vst [vmem:[#allocation7 + $0x8] sm:$0xff] %v77_v7  ;;  %v81_v17 = vadd.f32 %v65_v15, %v49_v14  ;;  %v66_v19 = vld [vmem:[#allocation5 + $0x30] sm:$0xff]  ;;  %v67_v22 = vld [vmem:[#allocation5 + $0x38] sm:$0xff]  ;;  %v52_v23 = vld [vmem:[#allocation2 + $0x40] sm:$0xff] }
  0x12   :  { %94 = vst [vmem:[#allocation7 + $0x10] sm:$0xff] %v78_v8  ;;  %v82_v21 = vadd.f32 %v66_v19, %v50_v18  ;;  %v68_v24 = vld [vmem:[#allocation5 + $0x40] sm:$0xff]  ;;  %v83_v25 = vadd.f32 %v67_v22, %v51_v20  ;;  %v53_v26 = vld [vmem:[#allocation2 + $0x48] sm:$0xff]  ;;  %v54_v28 = vld [vmem:[#allocation2 + $0x50] sm:$0xff] }
  0x13   :  { %95 = vst [vmem:[#allocation7 + $0x18] sm:$0xff] %v79_v12  ;;  %v69_v27 = vld [vmem:[#allocation5 + $0x48] sm:$0xff]  ;;  %v84_v29 = vadd.f32 %v68_v24, %v52_v23  ;;  %v70_v30 = vld [vmem:[#allocation5 + $0x50] sm:$0xff]  ;;  %v55_v31 = vld [vmem:[#allocation2 + $0x58] sm:$0xff] }
  0x14   :  { %96 = vst [vmem:[#allocation7 + $0x20] sm:$0xff] %v80_v16  ;;  %v71_v32 = vld [vmem:[#allocation5 + $0x58] sm:$0xff]  ;;  %v85_v33 = vadd.f32 %v69_v27, %v53_v26  ;;  %v56_v34 = vld [vmem:[#allocation2 + $0x60] sm:$0xff]  ;;  %v86_v36 = vadd.f32 %v70_v30, %v54_v28  ;;  %v57_v37 = vld [vmem:[#allocation2 + $0x68] sm:$0xff] }
  0x15   :  { %97 = vst [vmem:[#allocation7 + $0x28] sm:$0xff] %v81_v17  ;;  %v72_v35 = vld [vmem:[#allocation5 + $0x60] sm:$0xff]  ;;  %v73_v38 = vld [vmem:[#allocation5 + $0x68] sm:$0xff]  ;;  %v87_v39 = vadd.f32 %v71_v32, %v55_v31  ;;  %v58_v40 = vld [vmem:[#allocation2 + $0x70] sm:$0xff] }
  0x16   :  { %98 = vst [vmem:[#allocation7 + $0x30] sm:$0xff] %v82_v21  ;;  %v74_v41 = vld [vmem:[#allocation5 + $0x70] sm:$0xff]  ;;  %v88_v42 = vadd.f32 %v72_v35, %v56_v34  ;;  %v59_v43 = vld [vmem:[#allocation2 + $0x78] sm:$0xff]  ;;  %v89_v45 = vadd.f32 %v73_v38, %v57_v37 }
  0x17   :  { %99 = vst [vmem:[#allocation7 + $0x38] sm:$0xff] %v83_v25  ;;  %v75_v44 = vld [vmem:[#allocation5 + $0x78] sm:$0xff]  ;;  %v90_v46 = vadd.f32 %v74_v41, %v58_v40 }
  0x18   :  { %100 = vst [vmem:[#allocation7 + $0x40] sm:$0xff] %v84_v29  ;;  %v91_v47 = vadd.f32 %v75_v44, %v59_v43 }
  0x19   :  { %101 = vst [vmem:[#allocation7 + $0x48] sm:$0xff] %v85_v33 }
  0x1a   :  { %102 = vst [vmem:[#allocation7 + $0x50] sm:$0xff] %v86_v36 }
  0x1b   :  { %103 = vst [vmem:[#allocation7 + $0x58] sm:$0xff] %v87_v39 }
  0x1c   :  { %104 = vst [vmem:[#allocation7 + $0x60] sm:$0xff] %v88_v42 }
  0x1d   :  { %105 = vst [vmem:[#allocation7 + $0x68] sm:$0xff] %v89_v45 }
  0x1e   :  { %106 = vst [vmem:[#allocation7 + $0x70] sm:$0xff] %v90_v46 }
  0x1f   :  { %107 = vst [vmem:[#allocation7 + $0x78] sm:$0xff] %v91_v47 }
  0x20   :  { %120 = dma.vmem_to_hbm [thread:$0]  %s113_s1, 2048, %s115_s23, [#allocation4], %s212_s17, %s212_s17, %s213_s18  }
  0x21   :  { %209 = dma.done.wait [#allocation4], 2048  }
  0x22   :  { %210 = vsyncadd [#allocation4], 4294965248 }
  0x23   :  { %125 = vsyncpa [#allocation3], 1 }
  0x24   :  { %126 = vsyncpa [#allocation6], 1 }
  0x25   :  { %127 = vsyncpa [#allocation4], 1 }

</bundles_post_ra>
